<compile_context>
chip_gen: v6e
topology: v6e:2x2x1
jax: 0.10.0
libtpu: 0.0.40
codegen_flags: <defaults>
</compile_context>

<pallas_src>
import functools

import jax
import jax.numpy as jnp
from jax.experimental import pallas as pl
from jax.experimental.pallas import tpu as pltpu

OUT_LANES = 128          # lane-dense output slab width
MAX_BATCH_TILE = 256     # rows per grid step (256*128*4B = 128 KiB/out buffer)


def _round_up(x, m):
    return ((x + m - 1) // m) * m


# ------------------------------------------------------------------
# Fused actor+critic kernel
# ------------------------------------------------------------------
def _fused_kernel(x_ref, w1_ref, b1_ref, w2_ref, b2_ref, out_ref, *, action_dim):
    """One slab out: cols [0:action_dim] = softmax(actor logits),
                     col  action_dim     = critic value,
                     rest                = 0."""
    x = x_ref[...]
    # fused hidden layer: actor hidden | critic hidden | zero padding
    h = jnp.dot(x, w1_ref[...], preferred_element_type=jnp.float32) + b1_ref[...]
    h = jnp.maximum(h, 0.0)
    # block-diagonal second layer: one matmul produces logits + value in one slab
    y = jnp.dot(h, w2_ref[...], preferred_element_type=jnp.float32) + b2_ref[...]

    col = jax.lax.broadcasted_iota(jnp.int32, y.shape, 1)
    actor_mask = col < action_dim

    # numerically-stable softmax restricted to the actor columns
    logits = jnp.where(actor_mask, y, -1e30)
    m = jnp.max(logits, axis=-1, keepdims=True)
    e = jnp.exp(logits - m)                      # padded / critic cols -> 0
    denom = jnp.sum(e, axis=-1, keepdims=True)
    probs = e * pl.reciprocal(denom, approx=True)

    critic = jnp.where(col == action_dim, y, 0.0)
    out_ref[...] = probs + critic                # probs are 0 outside actor cols


@functools.partial(jax.jit, static_argnames=("action_dim",))
def _fused_forward(x, w1, b1, w2, b2, *, action_dim):
    """Returns (actor_probs [B, action_dim], critic_values [B, 1])."""
    B, state_dim = x.shape
    # pad batch to sublane multiple, then to a multiple of the batch tile
    block_b = min(MAX_BATCH_TILE, _round_up(B, 8))
    Bp = _round_up(_round_up(B, 8), block_b)
    if Bp != B:
        x = jnp.pad(x, ((0, Bp - B), (0, 0)))

    slab = pl.pallas_call(
        functools.partial(_fused_kernel, action_dim=action_dim),
        out_shape=jax.ShapeDtypeStruct((Bp, OUT_LANES), jnp.float32),
        grid_spec=pltpu.PrefetchScalarGridSpec(
            num_scalar_prefetch=0,
            grid=(Bp // block_b,),
            in_specs=[
                pl.BlockSpec((block_b, state_dim), lambda i: (i, 0)),  # x tile
                pl.BlockSpec(w1.shape, lambda i: (0, 0)),              # fused W1
                pl.BlockSpec(b1.shape, lambda i: (0, 0)),              # fused b1
                pl.BlockSpec(w2.shape, lambda i: (0, 0)),              # block-diag W2
                pl.BlockSpec(b2.shape, lambda i: (0, 0)),              # fused b2
            ],
            out_specs=pl.BlockSpec((block_b, OUT_LANES), lambda i: (i, 0)),
        ),
        compiler_params=pltpu.CompilerParams(
            dimension_semantics=("parallel",),   # shard batch tiles across TCs (v7x)
        ),
    )(x, w1, b1, w2, b2)

    probs = slab[:B, :action_dim]
    values = slab[:B, action_dim:action_dim + 1]
    return probs, values


# ------------------------------------------------------------------
# Module wrapper (parameter init + forward entry points)
# ------------------------------------------------------------------
class ActorCriticMLP:
    def __init__(self, state_dim=4, action_dim=2, hidden_dim=128, num_layers=2, key=None):
        # num_layers=2 -> Linear -> ReLU -> Linear (matches build_mlp default)
        if key is None:
            key = jax.random.PRNGKey(0)
        k = jax.random.split(key, 8)
        s = 0.1

        def lin(kw, kb, fan_in, fan_out):
            w = s * jax.random.normal(kw, (fan_in, fan_out), jnp.float32)
            b = s * jax.random.normal(kb, (1, fan_out), jnp.float32)
            return w, b

        # unpadded parameters (kept for reference / export)
        self.a_w1, self.a_b1 = lin(k[0], k[1], state_dim, hidden_dim)
        self.a_w2, self.a_b2 = lin(k[2], k[3], hidden_dim, action_dim)
        self.c_w1, self.c_b1 = lin(k[4], k[5], state_dim, hidden_dim)
        self.c_w2, self.c_b2 = lin(k[6], k[7], hidden_dim, 1)

        self.state_dim = state_dim
        self.action_dim = action_dim
        self.hidden_dim = hidden_dim

        # ---- build fused, lane-padded parameters ONCE at init ----
        H = hidden_dim
        Hcat = max(128, _round_up(2 * H, 128))        # concatenated + padded hidden
        # fused first layer: [state_dim, Hcat] = actor | critic | zero padding
        w1 = jnp.zeros((state_dim, Hcat), jnp.float32)
        w1 = w1.at[:, 0:H].set(self.a_w1)
        w1 = w1.at[:, H:2 * H].set(self.c_w1)
        b1 = jnp.zeros((1, Hcat), jnp.float32)
        b1 = b1.at[:, 0:H].set(self.a_b1)
        b1 = b1.at[:, H:2 * H].set(self.c_b1)
        # block-diagonal second layer: [Hcat, OUT_LANES]
        #   rows [0:H]   -> actor logits in cols [0:action_dim]
        #   rows [H:2H]  -> critic value in col  action_dim
        w2 = jnp.zeros((Hcat, OUT_LANES), jnp.float32)
        w2 = w2.at[0:H, 0:action_dim].set(self.a_w2)
        w2 = w2.at[H:2 * H, action_dim:action_dim + 1].set(self.c_w2)
        b2 = jnp.zeros((1, OUT_LANES), jnp.float32)
        b2 = b2.at[:, 0:action_dim].set(self.a_b2)
        b2 = b2.at[:, action_dim:action_dim + 1].set(self.c_b2)

        self.f_w1, self.f_b1, self.f_w2, self.f_b2 = w1, b1, w2, b2

    # one fused kernel call produces both heads
    def forward_actor_critic(self, states):
        return _fused_forward(states, self.f_w1, self.f_b1, self.f_w2, self.f_b2,
                              action_dim=self.action_dim)

    def forward(self, states):
        return self.forward_actor(states)

    def forward_actor(self, states):
        return self.forward_actor_critic(states)[0]

    def forward_critic(self, states):
        return self.forward_actor_critic(states)[1]

    def estimate_values(self, states, actions=None):
        return self.forward_critic(states)

    # TODO(synk): `predict` (Categorical / multinomial sampling) is host-side
    # sampling logic with no Pallas equivalent here; use jax.random on the probs.


# ------------------------------------------------------------------
# Main
# ------------------------------------------------------------------
if __name__ == "__main__":
    key = jax.random.PRNGKey(0)
    k_states, k_params = jax.random.split(key)

    batch, state_dim, action_dim, hidden_dim = 8, 4, 2, 32
    states = jax.random.normal(k_states, (batch, state_dim), jnp.float32)

    net = ActorCriticMLP(state_dim=state_dim, action_dim=action_dim,
                         hidden_dim=hidden_dim, num_layers=2, key=k_params)

    probs, values = net.forward_actor_critic(states)   # single fused kernel call
    jax.block_until_ready(probs)
    jax.block_until_ready(values)

    # sanity: reference in plain JAX with the unpadded weights
    def ref_actor(x):
        h = jnp.maximum(x @ net.a_w1 + net.a_b1, 0.0)
        return jax.nn.softmax(h @ net.a_w2 + net.a_b2, axis=-1)

    def ref_critic(x):
        h = jnp.maximum(x @ net.c_w1 + net.c_b1, 0.0)
        return h @ net.c_w2 + net.c_b2

    assert probs.shape == (batch, action_dim)
    assert values.shape == (batch, 1)
    # probs use the approximate (EUP) reciprocal -> slightly looser tolerance
    assert jnp.allclose(probs, ref_actor(states), atol=2e-3)
    assert jnp.allclose(jnp.sum(probs, axis=-1), 1.0, atol=2e-3)
    # critic path has no approximation
    assert jnp.allclose(values, ref_critic(states), atol=1e-5)

    # the public torch-style entry points still work (each hits the same jitted kernel)
    p2 = net.forward(states)
    v2 = net.estimate_values(states)
    jax.block_until_ready(p2)
    jax.block_until_ready(v2)
    assert jnp.allclose(p2, probs) and jnp.allclose(v2, values)

    print("KERNEL_OK")
</pallas_src>

<mosaic_0001>
module attributes {stable_mosaic.version = 11 : i64} {
  func.func @_fused_kernel(%arg0: i32, %arg1: memref<8x4xf32, #tpu.memory_space<vmem>>, %arg2: memref<4x128xf32, #tpu.memory_space<vmem>>, %arg3: memref<1x128xf32, #tpu.memory_space<vmem>>, %arg4: memref<128x128xf32, #tpu.memory_space<vmem>>, %arg5: memref<1x128xf32, #tpu.memory_space<vmem>>, %arg6: memref<8x128xf32, #tpu.memory_space<vmem>>) attributes {dimension_semantics = [#tpu.dimension_semantics<parallel>], iteration_bounds = array<i64: 1>, scalar_prefetch = 0 : i64, scratch_operands = 0 : i64, tpu.core_type = #tpu.core_type<tc>, window_params = [{transform_indices = @transform_0, window_bounds = array<i64: 8, 4>}, {pipeline_mode = #tpu.pipeline_mode<synchronous>, transform_indices = @transform_1, window_bounds = array<i64: 4, 128>}, {pipeline_mode = #tpu.pipeline_mode<synchronous>, transform_indices = @transform_2, window_bounds = array<i64: 1, 128>}, {pipeline_mode = #tpu.pipeline_mode<synchronous>, transform_indices = @transform_3, window_bounds = array<i64: 128, 128>}, {pipeline_mode = #tpu.pipeline_mode<synchronous>, transform_indices = @transform_4, window_bounds = array<i64: 1, 128>}, {transform_indices = @transform_5, window_bounds = array<i64: 8, 128>}]} {
    %c0 = arith.constant 0 : index
    %c0_0 = arith.constant 0 : index
    %0 = vector.load %arg1[%c0, %c0_0] : memref<8x4xf32, #tpu.memory_space<vmem>>, vector<8x4xf32>
    %c0_1 = arith.constant 0 : index
    %c0_2 = arith.constant 0 : index
    %1 = vector.load %arg2[%c0_1, %c0_2] : memref<4x128xf32, #tpu.memory_space<vmem>>, vector<4x128xf32>
    %cst = arith.constant dense<0.000000e+00> : vector<8x128xf32>
    %2 = tpu.matmul %0, %1, %cst {dimension_numbers = #tpu.dot_dimension_numbers<[1], [0], [0], [1], [0, 0, 1, 1], [], []>} : vector<8x4xf32>, vector<4x128xf32>, vector<8x128xf32> -> vector<8x128xf32>
    %c0_3 = arith.constant 0 : index
    %c0_4 = arith.constant 0 : index
    %3 = vector.load %arg3[%c0_3, %c0_4] : memref<1x128xf32, #tpu.memory_space<vmem>>, vector<1x128xf32>
    %4 = vector.broadcast %3 : vector<1x128xf32> to vector<8x128xf32>
    %5 = arith.addf %2, %4 : vector<8x128xf32>
    %cst_5 = arith.constant 0.000000e+00 : f32
    %6 = vector.broadcast %cst_5 : f32 to vector<8x128xf32>
    %7 = arith.maximumf %5, %6 : vector<8x128xf32>
    %c0_6 = arith.constant 0 : index
    %c0_7 = arith.constant 0 : index
    %8 = vector.load %arg4[%c0_6, %c0_7] : memref<128x128xf32, #tpu.memory_space<vmem>>, vector<128x128xf32>
    %cst_8 = arith.constant dense<0.000000e+00> : vector<8x128xf32>
    %9 = tpu.matmul %7, %8, %cst_8 {dimension_numbers = #tpu.dot_dimension_numbers<[1], [0], [0], [1], [0, 0, 1, 1], [], []>} : vector<8x128xf32>, vector<128x128xf32>, vector<8x128xf32> -> vector<8x128xf32>
    %c0_9 = arith.constant 0 : index
    %c0_10 = arith.constant 0 : index
    %10 = vector.load %arg5[%c0_9, %c0_10] : memref<1x128xf32, #tpu.memory_space<vmem>>, vector<1x128xf32>
    %11 = vector.broadcast %10 : vector<1x128xf32> to vector<8x128xf32>
    %12 = arith.addf %9, %11 : vector<8x128xf32>
    %13 = tpu.iota {dimensions = array<i32: 1>} : vector<8x128xi32>
    %c2_i32 = arith.constant 2 : i32
    %14 = vector.broadcast %c2_i32 : i32 to vector<8x128xi32>
    %15 = arith.cmpi slt, %13, %14 : vector<8x128xi32>
    %cst_11 = arith.constant -1.000000e+30 : f32
    %16 = vector.broadcast %cst_11 : f32 to vector<8x128xf32>
    %17 = arith.select %15, %12, %16 : vector<8x128xi1>, vector<8x128xf32>
    %cst_12 = arith.constant dense<0xFF800000> : vector<8xf32>
    %18 = vector.multi_reduction <maximumf>, %17, %cst_12 [1] : vector<8x128xf32> to vector<8xf32>
    %19 = vector.shape_cast %18 : vector<8xf32> to vector<8x1xf32>
    %20 = vector.broadcast %19 : vector<8x1xf32> to vector<8x128xf32>
    %21 = arith.subf %17, %20 : vector<8x128xf32>
    %22 = math.exp %21 : vector<8x128xf32>
    %cst_13 = arith.constant dense<0.000000e+00> : vector<8xf32>
    %23 = vector.multi_reduction <add>, %22, %cst_13 [1] : vector<8x128xf32> to vector<8xf32>
    %24 = vector.shape_cast %23 : vector<8xf32> to vector<8x1xf32>
    %25 = tpu.reciprocal %24 {approx = true} : vector<8x1xf32> -> vector<8x1xf32>
    %26 = vector.broadcast %25 : vector<8x1xf32> to vector<8x128xf32>
    %27 = arith.mulf %22, %26 : vector<8x128xf32>
    %c2_i32_14 = arith.constant 2 : i32
    %28 = vector.broadcast %c2_i32_14 : i32 to vector<8x128xi32>
    %29 = arith.cmpi eq, %13, %28 : vector<8x128xi32>
    %cst_15 = arith.constant 0.000000e+00 : f32
    %30 = vector.broadcast %cst_15 : f32 to vector<8x128xf32>
    %31 = arith.select %29, %12, %30 : vector<8x128xi1>, vector<8x128xf32>
    %32 = arith.addf %27, %31 : vector<8x128xf32>
    %c0_16 = arith.constant 0 : index
    %c0_17 = arith.constant 0 : index
    %33 = vector.load %arg6[%c0_16, %c0_17] : memref<8x128xf32, #tpu.memory_space<vmem>>, vector<8x128xf32>
    tpu.vector_store %arg6[%c0_16, %c0_17], %32 {strides = array<i32>} : memref<8x128xf32, #tpu.memory_space<vmem>>, vector<8x128xf32>,
    return
  }
  func.func @transform_0(%arg0: i32) -> (i32, i32) {
    %c0_i32 = arith.constant 0 : i32
    %c0_i32_0 = arith.constant 0 : i32
    return %arg0, %c0_i32 : i32, i32
  }
  func.func @transform_1(%arg0: i32) -> (i32, i32) {
    %c0_i32 = arith.constant 0 : i32
    %c0_i32_0 = arith.constant 0 : i32
    %c0_i32_1 = arith.constant 0 : i32
    return %c0_i32, %c0_i32_0 : i32, i32
  }
  func.func @transform_2(%arg0: i32) -> (i32, i32) {
    %c0_i32 = arith.constant 0 : i32
    %c0_i32_0 = arith.constant 0 : i32
    %c0_i32_1 = arith.constant 0 : i32
    return %c0_i32, %c0_i32_0 : i32, i32
  }
  func.func @transform_3(%arg0: i32) -> (i32, i32) {
    %c0_i32 = arith.constant 0 : i32
    %c0_i32_0 = arith.constant 0 : i32
    %c0_i32_1 = arith.constant 0 : i32
    return %c0_i32, %c0_i32_0 : i32, i32
  }
  func.func @transform_4(%arg0: i32) -> (i32, i32) {
    %c0_i32 = arith.constant 0 : i32
    %c0_i32_0 = arith.constant 0 : i32
    %c0_i32_1 = arith.constant 0 : i32
    return %c0_i32, %c0_i32_0 : i32, i32
  }
  func.func @transform_5(%arg0: i32) -> (i32, i32) {
    %c0_i32 = arith.constant 0 : i32
    %c0_i32_0 = arith.constant 0 : i32
    return %arg0, %c0_i32 : i32, i32
  }
}

</mosaic_0001>

<bundles_post_ra>
// kernel: _fused_forward.1
= control target key start
LH: loop header
LB: loop body
LE: loop exit
PB: predicated region body
PF: predicated region fallthrough
CT: control target
= control target key end

     0   :  { %10 = vsyncpa [#allocation3], 0  ;;  %s331_s18 = smov [#allocation2]   ;;  %s384_s0 = inlined_call_operand.vmem [shape: f32[8,4], index: 0, kind: input, shape index: {}]   ;;  %s385_s1 = inlined_call_operand.vmem [shape: f32[4,128], index: 1, kind: input, shape index: {}]   ;;  %s386_s2 = inlined_call_operand.vmem [shape: f32[1,128], index: 2, kind: input, shape index: {}]   ;;  %s387_s3 = inlined_call_operand.hbm [shape: f32[128,128], index: 3, kind: input, shape index: {}]   ;;  %s388_s4 = inlined_call_operand.vmem [shape: f32[1,128], index: 4, kind: input, shape index: {}]   ;;  %s389_s5 = inlined_call_operand.vmem [shape: f32[8,128], index: 5, kind: output, shape index: {}]  }
   0x1   :  { %s22_s19 = sshll.u32 %s331_s18, 4  ;;  %s23_s19 = int_to_ptr.vmem [resolvable:$true] %s22_s19 }
   0x2   :  { %s317_s20 = scalar_lea.vmem %s23_s19, 2048  ;;  %p322_p1 = scmp.lt.s32.totalorder %s23_s19, %s23_s19 }
   0x3   :  { %p318_p0 = scmp.ne.s32.totalorder %s23_s19, %s317_s20  ;;  %p323_p2 = scmp.lt.s32.totalorder %s317_s20, %s317_s20 }
   0x5   :  { %p324_p3 = por %p323_p2, %p322_p1 }
   0x7   :  { %p325_p4 = pnand %p324_p3, %p318_p0 }
   0x9   :  { %328 = shalt.err (!%p325_p4)
}
   0xa   :  { %s332_s21 = smov 128   ;;  %s333_s22 = smov 8  }
   0xb   :  { %28 = dma.hbm_to_vmem [thread:$0]  %s387_s3, 2048, %s23_s19, [#allocation3], %s332_s21, %s332_s21, %s333_s22  }
   0xc   :  { %329 = dma.done.wait [#allocation3], 2048  }
   0xd   :  { %330 = vsyncadd [#allocation3], 4294965248  ;;  %v334_v0 = vmov 0.0   ;;  %vm335_vm0 = vmmov 0   ;;  %vm47_vm1 = vcmask 1043456   ;;  %vm43_vm2 = vcmask 31744  }
   0xe   :  { %260 = vmatprep.subr.mxu0 %v334_v0  ;;  %262 = vmatprep.mubr.msk.f32.mxu0 %vm335_vm0, %v334_v0  ;;  %v35_v1 = vld [vmem:[%s385_s1] sm:$0xf]  ;;  %v137_v3 = vld [vmem:[#allocation2 + $0x78] sm:$0xff]  ;;  %v136_v4 = vld [vmem:[#allocation2 + $0x70] sm:$0xff]  ;;  %v215_v24 = vlaneseq }
   0xf   :  { %265 = vmatprep.subr.mxu1 %v334_v0  ;;  %297 = vmatprep.mubr.msk.f32.mxu1 %vm335_vm0, %v334_v0  ;;  %v34_v2 = vld [vmem:[%s384_s0] sm:$0xff]  ;;  %v135_v5 = vld [vmem:[#allocation2 + $0x68] sm:$0xff]  ;;  %v133_v7 = vld [vmem:[#allocation2 + $0x58] sm:$0xff] }
  0x10   :  { %261 = vmatpush3.msk.msra.mxu0 %vm47_vm1, %v35_v1  ;;  %266 = vmatpush3.msra.mxu1 %v137_v3  ;;  %v134_v6 = vld [vmem:[#allocation2 + $0x60] sm:$0xff]  ;;  %v132_v8 = vld [vmem:[#allocation2 + $0x50] sm:$0xff]  ;;  %v131_v9 = vld [vmem:[#allocation2 + $0x48] sm:$0xff]  ;;  %v216_v25 = vand.u32 127, %v215_v24 }
  0x11   :  { %263 = vmatmul.mubr.msk.f32.vlgmr.msra.gmra.mxu0 %vm43_vm2, %v34_v2  ;;  %267 = vmatprep.subr.mxu1 %v334_v0  ;;  %v130_v10 = vld [vmem:[#allocation2 + $0x40] sm:$0xff]  ;;  %v129_v11 = vld [vmem:[#allocation2 + $0x38] sm:$0xff]  ;;  %v128_v12 = vld [vmem:[#allocation2 + $0x30] sm:$0xff] }
  0x12   :  { %268 = vmatpush3.msra.mxu1 %v136_v4  ;;  %v127_v13 = vld [vmem:[#allocation2 + $0x28] sm:$0xff]  ;;  %v126_v14 = vld [vmem:[#allocation2 + $0x20] sm:$0xff]  ;;  %v125_v15 = vld [vmem:[#allocation2 + $0x18] sm:$0xff]  ;;  %vm228_vm3 = vcmp.eq.s32.totalorder %v216_v25, 2  ;;  %vm217_vm4 = vcmp.lt.s32.totalorder %v216_v25, 2 }
  0x13   :  { %269 = vmatprep.subr.mxu1 %v334_v0  ;;  %v124_v16 = vld [vmem:[#allocation2 + $0x10] sm:$0xff]  ;;  %v123_v17 = vld [vmem:[#allocation2 + $0x8] sm:$0xff]  ;;  %v122_v18 = vld [vmem:[#allocation2] sm:$0xff] }
  0x14   :  { %270 = vmatpush3.msra.mxu1 %v135_v5  ;;  %v237_v19 = vld [vmem:[%s386_s2] ss:$0 sm:$0xff] }
  0x15   :  { %271 = vmatprep.subr.mxu1 %v334_v0  ;;  %v240_v26 = vld [vmem:[%s388_s4] ss:$0 sm:$0xff] }
  0x16   :  { %272 = vmatpush3.msra.mxu1 %v134_v6 }
  0x17   :  { %273 = vmatprep.subr.mxu1 %v334_v0 }
  0x18   :  { %274 = vmatpush3.msra.mxu1 %v133_v7 }
  0x19   :  { %275 = vmatprep.subr.mxu1 %v334_v0 }
  0x1a   :  { %276 = vmatpush3.msra.mxu1 %v132_v8 }
  0x1b   :  { %277 = vmatprep.subr.mxu1 %v334_v0 }
  0x1c   :  { %278 = vmatpush3.msra.mxu1 %v131_v9 }
  0x1d   :  { %279 = vmatprep.subr.mxu1 %v334_v0 }
  0x1e   :  { %280 = vmatpush3.msra.mxu1 %v130_v10 }
  0x1f   :  { %281 = vmatprep.subr.mxu1 %v334_v0 }
  0x20   :  { %282 = vmatpush3.msra.mxu1 %v129_v11 }
  0x21   :  { %283 = vmatprep.subr.mxu1 %v334_v0 }
  0x22   :  { %284 = vmatpush3.msra.mxu1 %v128_v12 }
  0x23   :  { %285 = vmatprep.subr.mxu1 %v334_v0 }
  0x24   :  { %286 = vmatpush3.msra.mxu1 %v127_v13 }
  0x25   :  { %287 = vmatprep.subr.mxu1 %v334_v0 }
  0x26   :  { %288 = vmatpush3.msra.mxu1 %v126_v14 }
  0x27   :  { %289 = vmatprep.subr.mxu1 %v334_v0 }
  0x28   :  { %290 = vmatpush3.msra.mxu1 %v125_v15 }
  0x29   :  { %291 = vmatprep.subr.mxu1 %v334_v0 }
  0x2a   :  { %292 = vmatpush3.msra.mxu1 %v124_v16 }
  0x2b   :  { %293 = vmatprep.subr.mxu1 %v334_v0 }
  0x2c   :  { %294 = vmatpush3.msra.mxu1 %v123_v17 }
  0x2d   :  { %295 = vmatprep.subr.mxu1 %v334_v0 }
  0x2e   :  { %296 = vmatpush3.msra.mxu1 %v122_v18 }
  0xd1   :  { %v117_v20 = vpop.f32.mrf.mxu0 }
  0xd2   :  { %v118_v21 = vadd.f32 %v237_v19, %v117_v20 }
  0xd3   :  { %v264_v22 = vpop.f32.mrf.mxu0 }
  0xd4   :  { %v121_v23 = vmax.f32 %v118_v21, 0.0 }
  0xd6   :  { %298 = vmatmul.mubr.f32.vlgmr.msra.gmra.mxu1 %v121_v23 }
 0x196   :  { %v211_v27 = vpop.f32.mrf.mxu1 }
 0x197   :  { %v212_v28 = vadd.f32 %v240_v26, %v211_v27 }
 0x198   :  { %v299_v29 = vpop.f32.mrf.mxu1 }
 0x199   :  { %v229_v30 = vsel %vm228_vm3, %v212_v28, 0.0  ;;  %v218_v31 = vsel %vm217_vm4, %v212_v28, -1e+30 }
 0x19a   :  { %219 = vmax.xlane.f32.xlu0 %v218_v31 }
 0x223   :  { %v220_v32 = vpop.xlane.xlu0 %219 }
 0x224   :  { %v221_v33 = vsub.f32 %v218_v31, %v220_v32 }
 0x226   :  { %v222_v34 = vmul.f32 1.442695, %v221_v33 }
 0x228   :  { %305 = vpow2.f32 %v222_v34 }
 0x235   :  { %v306_v35 = vpop.eup %305 }
 0x236   :  { %224 = vadd.xlane.f32.xlu0 %v306_v35 }
 0x2bf   :  { %v225_v36 = vpop.xlane.xlu0 %224 }
 0x2c0   :  { %307 = vrcp.f32 %v225_v36 }
 0x2cd   :  { %v308_v37 = vpop.eup %307 }
 0x2ce   :  { %v227_v38 = vmul.f32 %v308_v37, %v306_v35 }
 0x2d0   :  { %v230_v39 = vadd.f32 %v229_v30, %v227_v38 }
 0x2d2   :  { %231 = vst [vmem:[%s389_s5] sm:$0xff] %v230_v39 }
 0x2d3   :  { %236 = vsyncpa [#allocation3], 1 }

</bundles_post_ra>
